<compile_context>
chip_gen: v7x
topology: tpu7x:2x2x1
jax: 0.10.0
libtpu: 0.0.40
codegen_flags: <defaults>
</compile_context>

<pallas_src>
import jax
import jax.numpy as jnp
from jax.experimental import pallas as pl
from jax.experimental.pallas import tpu as pltpu

_LANE = 128
_MAX_BATCH_UNROLL = 32  # images per grid step (kernel body is unrolled over this)


def _round_up(x, m):
    return ((x + m - 1) // m) * m


def _outconv_kernel(x_ref, w_ref, b_ref, o_ref):
    # x_ref: (bn, C_in, thw)   w_ref: (C_out, C_in)   b_ref: (C_out, 1)
    # o_ref: (bn, C_out, thw)
    w = w_ref[...]
    b = b_ref[...].astype(jnp.float32)
    # bn is a compile-time constant (block shape); static unroll avoids any
    # batched-dot transpose and keeps f32 accumulation on the MXU.
    for i in range(x_ref.shape[0]):
        acc = jnp.dot(w, x_ref[i], preferred_element_type=jnp.float32)
        o_ref[i] = (acc + b).astype(o_ref.dtype)


def _choose_tiling(N, C_in, C_out, HW, itemsize):
    """Pick (bn, thw, vmem_limit): >= ~1-4 MiB of real data per grid step while
    the sublane-padded, double-buffered blocks stay within a safe VMEM budget."""
    sub = max(8, 32 // itemsize)            # sublane rounding for this dtype
    pad_cin = _round_up(C_in, sub)
    pad_cout = _round_up(C_out, sub)
    # double-buffered VMEM bytes per unit of (bn * thw)
    vmem_bytes_per_unit = 2 * (pad_cin + pad_cout) * itemsize

    # Generation-aware VMEM budget for the pipelined blocks
    # (v7x: 64 MiB per TensorCore; v5e/v6e: 128 MiB).
    vmem_cap = 128 << 20
    try:
        vmem_cap = int(getattr(pltpu.get_tpu_info(), "vmem_capacity_bytes", vmem_cap))
    except Exception:
        pass
    block_budget = min(24 << 20, vmem_cap // 3)

    max_units = max(_LANE, block_budget // vmem_bytes_per_unit)   # cap on bn*thw
    target_thw = max(_LANE, min(131072, (max_units // _LANE) * _LANE))

    hw_rounded = _round_up(HW, _LANE)

    if hw_rounded >= target_thw:
        # Large image: one image per step, tile the spatial axis.
        bn = 1
        thw = target_thw
        if N == 1:
            # Keep >= 2 grid steps so both TensorCores stay busy on v7x.
            thw = min(thw, _round_up(pl.cdiv(hw_rounded, 2), _LANE))
        thw = max(_LANE, thw)
    else:
        # Small / medium image: whole spatial extent per step, pack several
        # images per step so the step still moves >= ~2 MiB of real data.
        thw = HW  # equals full array dim -> always a legal block shape
        real_bytes_per_unit = (C_in + C_out) * itemsize
        want_units = max(1, (2 << 20) // real_bytes_per_unit)
        bn = min(N,
                 max(1, want_units // hw_rounded),
                 max(1, max_units // hw_rounded),
                 _MAX_BATCH_UNROLL)
        bn = max(1, bn)

    vmem_footprint = bn * _round_up(thw, _LANE) * vmem_bytes_per_unit
    vmem_limit = int(min(48 << 20, max(32 << 20, vmem_footprint + (8 << 20))))
    return bn, thw, vmem_limit


@jax.jit
def outconv_forward(x_nchw, weight, bias):
    """1x1 conv forward.

    x_nchw: (N, C_in, H, W)
    weight: (C_out, C_in, 1, 1)   (PyTorch Conv2d layout)
    bias:   (C_out,)
    returns (N, C_out, H, W)
    """
    N, C_in, H, W = x_nchw.shape
    C_out = weight.shape[0]
    HW = H * W

    dtype = x_nchw.dtype
    itemsize = jnp.dtype(dtype).itemsize

    # Free reshapes -- no HBM traffic. Cast params to the activation dtype so a
    # bf16 activation stream really halves HBM traffic (accumulation stays f32).
    x3d = x_nchw.reshape(N, C_in, HW)
    w2d = weight.reshape(C_out, C_in).astype(dtype)
    b2d = bias.reshape(C_out, 1).astype(dtype)

    bn, thw, vmem_limit = _choose_tiling(N, C_in, C_out, HW, itemsize)
    grid = (pl.cdiv(N, bn), pl.cdiv(HW, thw))

    cost = pl.CostEstimate(
        flops=2 * N * HW * C_in * C_out,
        transcendentals=0,
        bytes_accessed=N * HW * (C_in + C_out) * itemsize
        + (C_out * C_in + C_out) * itemsize,
    )

    out3d = pl.pallas_call(
        _outconv_kernel,
        out_shape=jax.ShapeDtypeStruct((N, C_out, HW), dtype),
        grid_spec=pltpu.PrefetchScalarGridSpec(
            num_scalar_prefetch=0,
            grid=grid,
            in_specs=[
                pl.BlockSpec((bn, C_in, thw), lambda n, s: (n, 0, s)),
                pl.BlockSpec((C_out, C_in), lambda n, s: (0, 0)),
                pl.BlockSpec((C_out, 1), lambda n, s: (0, 0)),
            ],
            out_specs=pl.BlockSpec((bn, C_out, thw), lambda n, s: (n, 0, s)),
        ),
        compiler_params=pltpu.CompilerParams(
            dimension_semantics=("parallel", "parallel"),
            vmem_limit_bytes=vmem_limit,
        ),
        cost_estimate=cost,
    )(x3d, w2d, b2d)

    # (N, C_out, HW) -> (N, C_out, H, W): contiguous reshape, no data movement.
    return out3d.reshape(N, C_out, H, W)


if __name__ == "__main__":
    # Shapes consistent with outconv(in_ch=4, out_ch=3) applied to a small image.
    N, C_in, H, W = 2, 4, 16, 16
    C_out = 3

    key = jax.random.PRNGKey(0)
    kx, kw, kb = jax.random.split(key, 3)

    x = jax.random.normal(kx, (N, C_in, H, W), dtype=jnp.float32)
    # PyTorch Conv2d init-style synthetic parameters (weight shape (C_out, C_in, 1, 1)).
    fan_in = C_in  # kernel is 1x1
    bound = 1.0 / (fan_in ** 0.5)
    weight = jax.random.uniform(kw, (C_out, C_in, 1, 1), minval=-bound, maxval=bound,
                                dtype=jnp.float32)
    bias = jax.random.uniform(kb, (C_out,), minval=-bound, maxval=bound,
                              dtype=jnp.float32)

    out = outconv_forward(x, weight, bias)
    out = jax.block_until_ready(out)

    # Reference check against plain-JAX 1x1 conv (einsum over channels).
    ref = jnp.einsum("nchw,oc->nohw", x, weight.reshape(C_out, C_in)) \
        + bias[None, :, None, None]
    assert out.shape == (N, C_out, H, W)
    assert jnp.allclose(out, ref, atol=1e-5, rtol=1e-5)

    print("KERNEL_OK")
</pallas_src>

<mosaic_0001>
module attributes {stable_mosaic.version = 11 : i64} {
  func.func @_outconv_kernel(%arg0: i32, %arg1: i32, %arg2: memref<2x4x256xf32, #tpu.memory_space<vmem>>, %arg3: memref<3x4xf32, #tpu.memory_space<vmem>>, %arg4: memref<3x1xf32, #tpu.memory_space<vmem>>, %arg5: memref<2x3x256xf32, #tpu.memory_space<vmem>>) attributes {dimension_semantics = [#tpu.dimension_semantics<parallel>, #tpu.dimension_semantics<parallel>], iteration_bounds = array<i64: 1, 1>, scalar_prefetch = 0 : i64, scratch_operands = 0 : i64, tpu.core_type = #tpu.core_type<tc>, window_params = [{transform_indices = @transform_0, window_bounds = array<i64: 2, 4, 256>}, {pipeline_mode = #tpu.pipeline_mode<synchronous>, transform_indices = @transform_1, window_bounds = array<i64: 3, 4>}, {pipeline_mode = #tpu.pipeline_mode<synchronous>, transform_indices = @transform_2, window_bounds = array<i64: 3, 1>}, {transform_indices = @transform_3, window_bounds = array<i64: 2, 3, 256>}]} {
    %c0 = arith.constant 0 : index
    %c0_0 = arith.constant 0 : index
    %0 = vector.load %arg3[%c0, %c0_0] : memref<3x4xf32, #tpu.memory_space<vmem>>, vector<3x4xf32>
    %c0_1 = arith.constant 0 : index
    %c0_2 = arith.constant 0 : index
    %1 = vector.load %arg4[%c0_1, %c0_2] : memref<3x1xf32, #tpu.memory_space<vmem>>, vector<3x1xf32>
    %c0_3 = arith.constant 0 : index
    %c0_4 = arith.constant 0 : index
    %c0_5 = arith.constant 0 : index
    %2 = vector.load %arg2[%c0_3, %c0_4, %c0_5] : memref<2x4x256xf32, #tpu.memory_space<vmem>>, vector<1x4x256xf32>
    %3 = vector.shape_cast %2 : vector<1x4x256xf32> to vector<4x256xf32>
    %cst = arith.constant dense<0.000000e+00> : vector<3x256xf32>
    %4 = tpu.matmul %0, %3, %cst {dimension_numbers = #tpu.dot_dimension_numbers<[1], [0], [0], [1], [0, 0, 1, 1], [], []>} : vector<3x4xf32>, vector<4x256xf32>, vector<3x256xf32> -> vector<3x256xf32>
    %5 = vector.broadcast %1 : vector<3x1xf32> to vector<3x256xf32>
    %6 = arith.addf %4, %5 : vector<3x256xf32>
    %c0_6 = arith.constant 0 : index
    %c0_7 = arith.constant 0 : index
    %c0_8 = arith.constant 0 : index
    %7 = vector.load %arg5[%c0_6, %c0_7, %c0_8] : memref<2x3x256xf32, #tpu.memory_space<vmem>>, vector<1x3x256xf32>
    %8 = vector.shape_cast %7 : vector<1x3x256xf32> to vector<3x256xf32>
    %9 = vector.shape_cast %6 : vector<3x256xf32> to vector<1x3x256xf32>
    tpu.vector_store %arg5[%c0_6, %c0_7, %c0_8], %9 {strides = array<i32>} : memref<2x3x256xf32, #tpu.memory_space<vmem>>, vector<1x3x256xf32>,
    %c1 = arith.constant 1 : index
    %c0_9 = arith.constant 0 : index
    %c0_10 = arith.constant 0 : index
    %10 = vector.load %arg2[%c1, %c0_9, %c0_10] : memref<2x4x256xf32, #tpu.memory_space<vmem>>, vector<1x4x256xf32>
    %11 = vector.shape_cast %10 : vector<1x4x256xf32> to vector<4x256xf32>
    %cst_11 = arith.constant dense<0.000000e+00> : vector<3x256xf32>
    %12 = tpu.matmul %0, %11, %cst_11 {dimension_numbers = #tpu.dot_dimension_numbers<[1], [0], [0], [1], [0, 0, 1, 1], [], []>} : vector<3x4xf32>, vector<4x256xf32>, vector<3x256xf32> -> vector<3x256xf32>
    %13 = vector.broadcast %1 : vector<3x1xf32> to vector<3x256xf32>
    %14 = arith.addf %12, %13 : vector<3x256xf32>
    %c1_12 = arith.constant 1 : index
    %c0_13 = arith.constant 0 : index
    %c0_14 = arith.constant 0 : index
    %15 = vector.load %arg5[%c1_12, %c0_13, %c0_14] : memref<2x3x256xf32, #tpu.memory_space<vmem>>, vector<1x3x256xf32>
    %16 = vector.shape_cast %15 : vector<1x3x256xf32> to vector<3x256xf32>
    %17 = vector.shape_cast %14 : vector<3x256xf32> to vector<1x3x256xf32>
    tpu.vector_store %arg5[%c1_12, %c0_13, %c0_14], %17 {strides = array<i32>} : memref<2x3x256xf32, #tpu.memory_space<vmem>>, vector<1x3x256xf32>,
    return
  }
  func.func @transform_0(%arg0: i32, %arg1: i32) -> (i32, i32, i32) {
    %c0_i32 = arith.constant 0 : i32
    %c0_i32_0 = arith.constant 0 : i32
    return %arg0, %c0_i32, %arg1 : i32, i32, i32
  }
  func.func @transform_1(%arg0: i32, %arg1: i32) -> (i32, i32) {
    %c0_i32 = arith.constant 0 : i32
    %c0_i32_0 = arith.constant 0 : i32
    %c0_i32_1 = arith.constant 0 : i32
    return %c0_i32, %c0_i32_0 : i32, i32
  }
  func.func @transform_2(%arg0: i32, %arg1: i32) -> (i32, i32) {
    %c0_i32 = arith.constant 0 : i32
    %c0_i32_0 = arith.constant 0 : i32
    %c0_i32_1 = arith.constant 0 : i32
    return %c0_i32, %c0_i32_0 : i32, i32
  }
  func.func @transform_3(%arg0: i32, %arg1: i32) -> (i32, i32, i32) {
    %c0_i32 = arith.constant 0 : i32
    %c0_i32_0 = arith.constant 0 : i32
    return %arg0, %c0_i32, %arg1 : i32, i32, i32
  }
}

</mosaic_0001>

<bundles_post_ra>
// kernel: outconv_forward.1
= control target key start
LH: loop header
LB: loop body
LE: loop exit
PB: predicated region body
PF: predicated region fallthrough
CT: control target
= control target key end

     0   :  { %vm28_vm0 = vcmask 1043456   ;;  %v211_v2 = vmov 0.0   ;;  %v212_v5 = vmov 0   ;;  %vm24_vm1 = vcmask 31744   ;;  %s255_s0 = inlined_call_operand.vmem [shape: f32[2,4,256], index: 0, kind: input, shape index: {}]   ;;  %s256_s1 = inlined_call_operand.vmem [shape: f32[3,4], index: 1, kind: input, shape index: {}]   ;;  %s257_s2 = inlined_call_operand.vmem [shape: f32[3,1], index: 2, kind: input, shape index: {}]   ;;  %s258_s3 = inlined_call_operand.vmem [shape: f32[2,3,256], index: 3, kind: output, shape index: {}]  }
   0x1   :  { %v16_v0 = vld [vmem:[%s255_s0] sm:$0xff]  ;;  %v201_v1 = vld [vmem:[%s255_s0 + $0x8] sm:$0xff]  ;;  %97 = vmatprep.mubr.f32.mxu0 %v211_v2  ;;  %181 = vmatprep.mubr.f32.mxu1 %v211_v2 }
   0x2   :  { %v23_v3 = vcombine.high %v16_v0, %v16_v0  ;;  %v112_v4 = vcombine.high %v201_v1, %v201_v1  ;;  %208 = vset.pattern.permute.xlu0 %v212_v5  ;;  %v15_v6 = vld [vmem:[%s257_s2] sm:$0x7] }
   0x3   :  { %v14_v7 = vld [vmem:[%s256_s1] sm:$0x7]  ;;  %19 = vperm.xlu0 %208, %v15_v6  }
   0x4   :  { %198 = vmatprep.subr.msk.mxu0 %vm28_vm0, %v23_v3  ;;  %202 = vmatprep.subr.msk.mxu1 %vm28_vm0, %v112_v4 }
   0x5   :  { %199 = vmatpush1.msk.msra.mxu0 %vm28_vm0, %v16_v0  ;;  %203 = vmatpush1.msk.msra.mxu1 %vm28_vm0, %v201_v1 }
   0x6   :  { %200 = vmatmul.mubr.msk.f32.vlgmr.msra.gmra.mrb[0].mxu0 %vm24_vm1, %v14_v7  ;;  %204 = vmatmul.mubr.msk.f32.vlgmr.msra.gmra.mrb[0].mxu1 %vm24_vm1, %v14_v7 }
  0x82   :  { %v20_v8 = vpop.permute.xlu0 %19 }
  0xd9   :  { %v99_v9 = vpop.f32.mrb[0].mxu0  ;;  %v183_v10 = vpop.f32.mrb[0].mxu1 }
  0xda   :  { %v100_v11 = vadd.f32 %v99_v9, %v20_v8  ;;  %v184_v12 = vadd.f32 %v183_v10, %v20_v8  ;;  %v101_v13 = vpop.f32.mrb[1].mxu0  ;;  %v185_v14 = vpop.f32.mrb[1].mxu1 }
  0xdb   :  { %v102_v15 = vadd.f32 %v101_v13, %v20_v8  ;;  %v186_v16 = vadd.f32 %v185_v14, %v20_v8 }
  0xdd   :  { %v106_v17 = vcombine.low %v100_v11, %v102_v15  ;;  %v190_v18 = vcombine.low %v184_v12, %v186_v16 }
  0xdf   :  { %108 = vst [vmem:[%s258_s3] sm:$0x77] %v106_v17  ;;  %205 = vst [vmem:[%s258_s3 + $0x8] sm:$0x77] %v190_v18 }

</bundles_post_ra>
